<compile_context>
chip_gen: v7x
topology: tpu7x:2x2x1
jax: 0.10.0
libtpu: 0.0.40
codegen_flags: <defaults>
</compile_context>

<pallas_src>
import math

import jax
import jax.numpy as jnp
from jax.experimental import pallas as pl
from jax.experimental.pallas import tpu as pltpu


def _round_up(a, b):
    return (a + b - 1) // b * b


def _gelu_tanh(x):
    # tanh-approx GELU (identical math to the PyTorch module), written as
    # 0.5*x*(1 + tanh(c*x*(1 + 0.044715*x^2))) to drop one VPU multiply.
    c = jnp.float32(math.sqrt(2.0 / math.pi))
    return 0.5 * x * (1.0 + jnp.tanh(c * x * (1.0 + 0.044715 * (x * x))))


def _chip_config():
    """Per-generation tuning: VMEM capacity, lane granularity, tile targets."""
    kind = ""
    try:
        kind = jax.devices()[0].device_kind.lower()
    except Exception:
        pass
    if "v7" in kind or "7x" in kind:
        # v7x: 64 MiB VMEM/TC, ~3.2 TB/s HBM, 2 TCs -> balance ~310 flop/byte.
        return dict(vmem=64 << 20, lane=256, tm=512, th=1024, two_cores=True)
    if "v6" in kind:
        # v6e: 128 MiB VMEM, ~1.4 TB/s HBM, 918 TF/s -> balance ~650 flop/byte.
        return dict(vmem=128 << 20, lane=256, tm=1024, th=2048, two_cores=False)
    if "v5" in kind or "v4" in kind:
        # v5e: 128 MiB VMEM, ~0.82 TB/s HBM, 197 TF/s -> balance ~240 flop/byte.
        return dict(vmem=128 << 20, lane=128, tm=512, th=1024, two_cores=False)
    # Unknown chip: conservative settings.
    return dict(vmem=64 << 20, lane=128, tm=512, th=1024, two_cores=False)


def _pad_lane(n, lane_mult):
    p = _round_up(n, 128)
    if lane_mult > 128 and p > 128:          # 256-wide MXU on v6e/v7x
        p = _round_up(p, lane_mult)
    return p


def _vmem_footprint(tm, th, d_pad, cd_bytes, out_bytes):
    """Estimated VMEM bytes for one pipelined step at tile sizes (tm, th)."""
    x_tile = 2 * tm * d_pad * cd_bytes           # double-buffered x tile
    o_tile = 2 * tm * d_pad * out_bytes          # double-buffered out tile
    acc = tm * d_pad * 4                         # f32 accumulator scratch
    w = 2 * 2 * d_pad * th * cd_bytes            # W1 + W2 slabs, double-buffered
    bias = 2 * th * 4 + 2 * d_pad * 4
    gelu = tm * th * (4 + cd_bytes)              # f32 h + cast copy (internal scratch)
    return x_tile + o_tile + acc + w + bias + gelu


def _row_tiling(m, tm_target, two_cores):
    """Pick (tm, n_row_tiles, m_pad) minimizing padding near tm_target."""
    n_row = 1 if m <= tm_target else pl.cdiv(m, tm_target)
    if two_cores:
        if n_row == 1 and m >= 32:
            n_row = 2                            # don't strand a TensorCore
        elif n_row > 1 and n_row % 2:
            n_row += 1                           # even tile count across 2 TCs
    tm_sel = _round_up(max(pl.cdiv(m, n_row), 8), 16)
    return tm_sel, n_row, tm_sel * n_row


def _ffn_kernel(x_ref, w1_ref, b1_ref, w2_ref, b2_ref, o_ref, acc_ref):
    # x_ref : (TM, Dp)   w1_ref: (Dp, TH)   b1_ref: (1, TH) f32
    # w2_ref: (TH, Dp)   b2_ref: (1, Dp) f32
    # o_ref : (TM, Dp)   acc_ref: (TM, Dp) f32 scratch accumulator
    j = pl.program_id(1)

    @pl.when(j == 0)
    def _():
        acc_ref[...] = jnp.zeros_like(acc_ref)

    # First linear on this hidden slab (MXU, f32 accumulation), bias + GELU in f32.
    h = jnp.dot(x_ref[...], w1_ref[...], preferred_element_type=jnp.float32)
    h = _gelu_tanh(h + b1_ref[...])

    # Second linear: accumulate this slab's contribution to the output tile.
    acc_ref[...] += jnp.dot(h.astype(w2_ref.dtype), w2_ref[...],
                            preferred_element_type=jnp.float32)

    @pl.when(j == pl.num_programs(1) - 1)
    def _():
        o_ref[...] = (acc_ref[...] + b2_ref[...]).astype(o_ref.dtype)


def feed_forward(x, w1, b1, w2, b2, *, compute_dtype=jnp.bfloat16,
                 tm=None, th=None):
    """x: (batch, seq, emb_dim). w1: (emb_dim, hidden), w2: (hidden, emb_dim).

    Returns (batch, seq, emb_dim) with x.dtype.

    Note: with the default compute_dtype=bf16, inputs/weights are downcast for
    the MXU (accumulation stays f32). Pass compute_dtype=jnp.float32 for full
    precision at lower throughput.
    """
    batch, seq, emb_dim = x.shape
    hidden = w1.shape[1]
    m = batch * seq
    out_dtype = x.dtype
    cd_bytes = jnp.dtype(compute_dtype).itemsize
    out_bytes = jnp.dtype(out_dtype).itemsize

    cfg = _chip_config()
    vmem_budget = int(cfg["vmem"] * 0.70)
    vmem_limit = int(cfg["vmem"] * 0.80)

    d_pad = _pad_lane(emb_dim, cfg["lane"])
    h_base = _pad_lane(hidden, cfg["lane"])

    # ---- row (M) tiling -----------------------------------------------------
    tm_cap = tm or cfg["tm"]
    tm_sel, n_row, m_pad = _row_tiling(m, tm_cap, cfg["two_cores"])

    # ---- hidden (reduction) tiling, with VMEM-fit checks ----------------------
    gran = cfg["lane"] if h_base % cfg["lane"] == 0 else 128

    def fits(tm_, th_):
        return _vmem_footprint(tm_, th_, d_pad, cd_bytes, out_bytes) <= vmem_budget

    if fits(tm_sel, h_base):
        # Weight-resident fast path: single hidden slab -> constant W1/W2 block
        # indices -> weights are DMAed from HBM exactly once (not per row tile).
        th_sel, n_slab = h_base, 1
    else:
        th_sel = min(_round_up(th or cfg["th"], gran), h_base)
        while not fits(tm_sel, th_sel) and th_sel > gran:
            th_sel = max(gran, (th_sel // 2) // gran * gran)
        while not fits(tm_sel, th_sel) and tm_cap > 16:
            # TODO(synk): for huge emb_dim (d_pad >~ 8K on v7x) tile the output
            # (emb) dimension instead of only shrinking the row tile.
            tm_cap = max(16, tm_cap // 2)
            tm_sel, n_row, m_pad = _row_tiling(m, tm_cap, cfg["two_cores"])
        n_slab = pl.cdiv(h_base, th_sel)
        th_sel = _round_up(max(pl.cdiv(h_base, n_slab), 128), gran)
    h_pad = th_sel * n_slab

    # ---- pad operands (zero-padding is exact: gelu(0)=0 hits zero W2 rows; ----
    # ---- padded output rows/cols are sliced off) ------------------------------
    x2d = jnp.pad(x.reshape(m, emb_dim).astype(compute_dtype),
                  ((0, m_pad - m), (0, d_pad - emb_dim)))
    w1p = jnp.pad(w1.astype(compute_dtype),
                  ((0, d_pad - emb_dim), (0, h_pad - hidden)))
    b1p = jnp.pad(b1.astype(jnp.float32), (0, h_pad - hidden)).reshape(1, h_pad)
    w2p = jnp.pad(w2.astype(compute_dtype),
                  ((0, h_pad - hidden), (0, d_pad - emb_dim)))
    b2p = jnp.pad(b2.astype(jnp.float32), (0, d_pad - emb_dim)).reshape(1, d_pad)

    grid = (n_row, n_slab)   # (row tiles: parallel, hidden slabs: reduction)

    # Real HBM traffic: weights stream once per row tile unless resident.
    weight_passes = 1 if (n_slab == 1 or n_row == 1) else n_row
    cost = pl.CostEstimate(
        flops=4 * m_pad * d_pad * h_pad,          # two matmuls, 2*M*D*H each
        transcendentals=m_pad * h_pad,            # one tanh per hidden element
        bytes_accessed=(x2d.size * cd_bytes
                        + weight_passes * (w1p.size + w2p.size) * cd_bytes
                        + b1p.size * 4 + b2p.size * 4
                        + m_pad * d_pad * out_bytes),
    )

    out2d = pl.pallas_call(
        _ffn_kernel,
        out_shape=jax.ShapeDtypeStruct((m_pad, d_pad), out_dtype),
        grid=grid,
        in_specs=[
            pl.BlockSpec((tm_sel, d_pad), lambda i, j: (i, 0)),   # x row tile
            pl.BlockSpec((d_pad, th_sel), lambda i, j: (0, j)),   # W1 column slab
            pl.BlockSpec((1, th_sel),     lambda i, j: (0, j)),   # b1 slab
            pl.BlockSpec((th_sel, d_pad), lambda i, j: (j, 0)),   # W2 row slab
            pl.BlockSpec((1, d_pad),      lambda i, j: (0, 0)),   # b2 (resident)
        ],
        out_specs=pl.BlockSpec((tm_sel, d_pad), lambda i, j: (i, 0)),
        scratch_shapes=[pltpu.VMEM((tm_sel, d_pad), jnp.float32)],
        compiler_params=pltpu.CompilerParams(
            dimension_semantics=("parallel", "arbitrary"),
            vmem_limit_bytes=vmem_limit,
        ),
        cost_estimate=cost,
    )(x2d, w1p, b1p, w2p, b2p)

    return out2d[:m, :emb_dim].reshape(batch, seq, emb_dim)


def feed_forward_ref(x, w1, b1, w2, b2):
    """Pure-JAX f32 reference (mirrors the PyTorch forward)."""
    h = jnp.einsum("bsd,dh->bsh", x, w1) + b1
    c = jnp.float32(math.sqrt(2.0 / math.pi))
    h = 0.5 * h * (1.0 + jnp.tanh(c * (h + 0.044715 * h ** 3)))
    return jnp.einsum("bsh,hd->bsd", h, w2) + b2


if __name__ == "__main__":
    cfg = {"emb_dim": 32}
    batch, seq = 2, 8
    emb_dim = cfg["emb_dim"]
    hidden = 4 * emb_dim

    key = jax.random.PRNGKey(0)
    kx, k1, k2, k3, k4 = jax.random.split(key, 5)

    x = jax.random.normal(kx, (batch, seq, emb_dim), dtype=jnp.float32)

    # Deterministic init mimicking nn.Linear's uniform(-1/sqrt(fan_in), ...).
    lim1 = 1.0 / math.sqrt(emb_dim)
    lim2 = 1.0 / math.sqrt(hidden)
    w1 = jax.random.uniform(k1, (emb_dim, hidden), jnp.float32, -lim1, lim1)
    b1 = jax.random.uniform(k2, (hidden,), jnp.float32, -lim1, lim1)
    w2 = jax.random.uniform(k3, (hidden, emb_dim), jnp.float32, -lim2, lim2)
    b2 = jax.random.uniform(k4, (emb_dim,), jnp.float32, -lim2, lim2)

    out = jax.block_until_ready(feed_forward(x, w1, b1, w2, b2))
    ref = feed_forward_ref(x, w1, b1, w2, b2)

    assert out.shape == (batch, seq, emb_dim)
    # bf16 MXU operands with f32 accumulation -> loosened tolerance vs f32 ref.
    assert jnp.allclose(out, ref, atol=2e-2, rtol=2e-2), "mismatch vs reference"

    print("KERNEL_OK")
</pallas_src>

<mosaic_0001>
module attributes {stable_mosaic.version = 11 : i64} {
  func.func @_ffn_kernel(%arg0: i32, %arg1: i32, %arg2: memref<16x128xbf16, #tpu.memory_space<vmem>>, %arg3: memref<128x128xbf16, #tpu.memory_space<vmem>>, %arg4: memref<1x128xf32, #tpu.memory_space<vmem>>, %arg5: memref<128x128xbf16, #tpu.memory_space<vmem>>, %arg6: memref<1x128xf32, #tpu.memory_space<vmem>>, %arg7: memref<16x128xf32, #tpu.memory_space<vmem>>, %arg8: memref<16x128xf32, #tpu.memory_space<vmem>>) attributes {dimension_semantics = [#tpu.dimension_semantics<parallel>, #tpu.dimension_semantics<arbitrary>], iteration_bounds = array<i64: 1, 1>, scalar_prefetch = 0 : i64, scratch_operands = 1 : i64, tpu.core_type = #tpu.core_type<tc>, window_params = [{transform_indices = @transform_0, window_bounds = array<i64: 16, 128>}, {transform_indices = @transform_1, window_bounds = array<i64: 128, 128>}, {transform_indices = @transform_2, window_bounds = array<i64: 1, 128>}, {transform_indices = @transform_3, window_bounds = array<i64: 128, 128>}, {pipeline_mode = #tpu.pipeline_mode<synchronous>, transform_indices = @transform_4, window_bounds = array<i64: 1, 128>}, {transform_indices = @transform_5, window_bounds = array<i64: 16, 128>}]} {
    %c0_i32 = arith.constant 0 : i32
    %0 = arith.cmpi eq, %arg1, %c0_i32 : i32
    %1 = arith.extui %0 : i1 to i32
    %c0_i32_0 = arith.constant 0 : i32
    %2 = arith.cmpi ne, %1, %c0_i32_0 : i32
    scf.if %2 {
      %cst_20 = arith.constant 0.000000e+00 : f32
      %32 = vector.broadcast %cst_20 : f32 to vector<16x128xf32>
      %c0_21 = arith.constant 0 : index
      %c0_22 = arith.constant 0 : index
      %33 = vector.load %arg8[%c0_21, %c0_22] : memref<16x128xf32, #tpu.memory_space<vmem>>, vector<16x128xf32>
      tpu.vector_store %arg8[%c0_21, %c0_22], %32 {strides = array<i32>} : memref<16x128xf32, #tpu.memory_space<vmem>>, vector<16x128xf32>,
    } else {
    }
    %c0 = arith.constant 0 : index
    %c0_1 = arith.constant 0 : index
    %3 = vector.load %arg2[%c0, %c0_1] : memref<16x128xbf16, #tpu.memory_space<vmem>>, vector<16x128xbf16>
    %c0_2 = arith.constant 0 : index
    %c0_3 = arith.constant 0 : index
    %4 = vector.load %arg3[%c0_2, %c0_3] : memref<128x128xbf16, #tpu.memory_space<vmem>>, vector<128x128xbf16>
    %cst = arith.constant dense<0.000000e+00> : vector<16x128xf32>
    %5 = tpu.matmul %3, %4, %cst {dimension_numbers = #tpu.dot_dimension_numbers<[1], [0], [0], [1], [0, 0, 1, 1], [], []>} : vector<16x128xbf16>, vector<128x128xbf16>, vector<16x128xf32> -> vector<16x128xf32>
    %c0_4 = arith.constant 0 : index
    %c0_5 = arith.constant 0 : index
    %6 = vector.load %arg4[%c0_4, %c0_5] : memref<1x128xf32, #tpu.memory_space<vmem>>, vector<1x128xf32>
    %7 = vector.broadcast %6 : vector<1x128xf32> to vector<16x128xf32>
    %8 = arith.addf %5, %7 : vector<16x128xf32>
    %cst_6 = arith.constant 5.000000e-01 : f32
    %9 = vector.broadcast %cst_6 : f32 to vector<16x128xf32>
    %10 = arith.mulf %9, %8 : vector<16x128xf32>
    %cst_7 = arith.constant 0.797884583 : f32
    %11 = vector.broadcast %cst_7 : f32 to vector<16x128xf32>
    %12 = arith.mulf %11, %8 : vector<16x128xf32>
    %13 = arith.mulf %8, %8 : vector<16x128xf32>
    %cst_8 = arith.constant 4.471500e-02 : f32
    %14 = vector.broadcast %cst_8 : f32 to vector<16x128xf32>
    %15 = arith.mulf %14, %13 : vector<16x128xf32>
    %cst_9 = arith.constant 1.000000e+00 : f32
    %16 = vector.broadcast %cst_9 : f32 to vector<16x128xf32>
    %17 = arith.addf %16, %15 : vector<16x128xf32>
    %18 = arith.mulf %12, %17 : vector<16x128xf32>
    %19 = math.tanh %18 : vector<16x128xf32>
    %cst_10 = arith.constant 1.000000e+00 : f32
    %20 = vector.broadcast %cst_10 : f32 to vector<16x128xf32>
    %21 = arith.addf %20, %19 : vector<16x128xf32>
    %22 = arith.mulf %10, %21 : vector<16x128xf32>
    %c0_11 = arith.constant 0 : index
    %c0_12 = arith.constant 0 : index
    %23 = vector.load %arg8[%c0_11, %c0_12] : memref<16x128xf32, #tpu.memory_space<vmem>>, vector<16x128xf32>
    %24 = arith.truncf %22 : vector<16x128xf32> to vector<16x128xbf16>
    %c0_13 = arith.constant 0 : index
    %c0_14 = arith.constant 0 : index
    %25 = vector.load %arg5[%c0_13, %c0_14] : memref<128x128xbf16, #tpu.memory_space<vmem>>, vector<128x128xbf16>
    %cst_15 = arith.constant dense<0.000000e+00> : vector<16x128xf32>
    %26 = tpu.matmul %24, %25, %cst_15 {dimension_numbers = #tpu.dot_dimension_numbers<[1], [0], [0], [1], [0, 0, 1, 1], [], []>} : vector<16x128xbf16>, vector<128x128xbf16>, vector<16x128xf32> -> vector<16x128xf32>
    %27 = arith.addf %23, %26 : vector<16x128xf32>
    %c0_16 = arith.constant 0 : index
    %c0_17 = arith.constant 0 : index
    %28 = vector.load %arg8[%c0_16, %c0_17] : memref<16x128xf32, #tpu.memory_space<vmem>>, vector<16x128xf32>
    tpu.vector_store %arg8[%c0_16, %c0_17], %27 {strides = array<i32>} : memref<16x128xf32, #tpu.memory_space<vmem>>, vector<16x128xf32>,
    %c0_i32_18 = arith.constant 0 : i32
    %29 = arith.cmpi eq, %arg1, %c0_i32_18 : i32
    %30 = arith.extui %29 : i1 to i32
    %c0_i32_19 = arith.constant 0 : i32
    %31 = arith.cmpi ne, %30, %c0_i32_19 : i32
    scf.if %31 {
      %c0_20 = arith.constant 0 : index
      %c0_21 = arith.constant 0 : index
      %32 = vector.load %arg8[%c0_20, %c0_21] : memref<16x128xf32, #tpu.memory_space<vmem>>, vector<16x128xf32>
      %c0_22 = arith.constant 0 : index
      %c0_23 = arith.constant 0 : index
      %33 = vector.load %arg6[%c0_22, %c0_23] : memref<1x128xf32, #tpu.memory_space<vmem>>, vector<1x128xf32>
      %34 = vector.broadcast %33 : vector<1x128xf32> to vector<16x128xf32>
      %35 = arith.addf %32, %34 : vector<16x128xf32>
      %c0_24 = arith.constant 0 : index
      %c0_25 = arith.constant 0 : index
      %36 = vector.load %arg7[%c0_24, %c0_25] : memref<16x128xf32, #tpu.memory_space<vmem>>, vector<16x128xf32>
      tpu.vector_store %arg7[%c0_24, %c0_25], %35 {strides = array<i32>} : memref<16x128xf32, #tpu.memory_space<vmem>>, vector<16x128xf32>,
    } else {
    }
    return
  }
  func.func @transform_0(%arg0: i32, %arg1: i32) -> (i32, i32) {
    %c0_i32 = arith.constant 0 : i32
    %c0_i32_0 = arith.constant 0 : i32
    return %arg0, %c0_i32 : i32, i32
  }
  func.func @transform_1(%arg0: i32, %arg1: i32) -> (i32, i32) {
    %c0_i32 = arith.constant 0 : i32
    %c0_i32_0 = arith.constant 0 : i32
    return %c0_i32, %arg1 : i32, i32
  }
  func.func @transform_2(%arg0: i32, %arg1: i32) -> (i32, i32) {
    %c0_i32 = arith.constant 0 : i32
    %c0_i32_0 = arith.constant 0 : i32
    return %c0_i32, %arg1 : i32, i32
  }
  func.func @transform_3(%arg0: i32, %arg1: i32) -> (i32, i32) {
    %c0_i32 = arith.constant 0 : i32
    %c0_i32_0 = arith.constant 0 : i32
    return %arg1, %c0_i32 : i32, i32
  }
  func.func @transform_4(%arg0: i32, %arg1: i32) -> (i32, i32) {
    %c0_i32 = arith.constant 0 : i32
    %c0_i32_0 = arith.constant 0 : i32
    %c0_i32_1 = arith.constant 0 : i32
    return %c0_i32, %c0_i32_0 : i32, i32
  }
  func.func @transform_5(%arg0: i32, %arg1: i32) -> (i32, i32) {
    %c0_i32 = arith.constant 0 : i32
    %c0_i32_0 = arith.constant 0 : i32
    return %arg0, %c0_i32 : i32, i32
  }
}

</mosaic_0001>

<bundles_post_ra>
// kernel: tpu_custom_call.1
= control target key start
LH: loop header
LB: loop body
LE: loop exit
PB: predicated region body
PF: predicated region fallthrough
CT: control target
= control target key end

     0   :  { %10 = vsyncpa [#allocation4], 0  ;;  %s665_s0 = inlined_call_operand.hbm [shape: bf16[16,128], index: 0, kind: input, shape index: {}]   ;;  %s666_s1 = inlined_call_operand.hbm [shape: bf16[128,128], index: 1, kind: input, shape index: {}]   ;;  %s667_s2 = inlined_call_operand.vmem [shape: f32[1,128], index: 2, kind: input, shape index: {}]   ;;  %s668_s3 = inlined_call_operand.hbm [shape: bf16[128,128], index: 3, kind: input, shape index: {}]   ;;  %s669_s4 = inlined_call_operand.vmem [shape: f32[1,128], index: 4, kind: input, shape index: {}]   ;;  %s670_s5 = inlined_call_operand.hbm [shape: f32[16,128], index: 5, kind: output, shape index: {}]  }
   0x1   :  { %11 = vsyncpa [#allocation7], 0 }
   0x2   :  { %12 = vsyncpa [#allocation5], 0  ;;  %s555_s18 = smov [#allocation6]   ;;  %s556_s20 = smov [#allocation3]  }
   0x3   :  { %s30_s19 = sshll.u32 %s555_s18, 4  ;;  %s18_s21 = sshll.u32 %s556_s20, 4  ;;  %s31_s19 = int_to_ptr.vmem [resolvable:$true] %s30_s19  ;;  %s595_s21 = int_to_ptr.vmem [resolvable:$true] %s18_s21 }
   0x4   :  { %s461_s24 = scalar_lea.hbm %s666_s1, 1024 }
   0x5   :  { %p462_p0 = scmp.ne.s32.totalorder %s666_s1, %s461_s24  ;;  %p465_p1 = scmp.lt.u32.totalorder %s461_s24, %s666_s1 }
   0x7   :  { %p467_p2 = pnand %p465_p1, %p462_p0 }
   0x9   :  { %470 = shalt.err (!%p467_p2)
}
   0xa   :  { %s471_s29 = scalar_lea.vmem %s31_s19, 1024  ;;  %p476_p4 = scmp.lt.s32.totalorder %s31_s19, %s31_s19 }
   0xb   :  { %p472_p3 = scmp.ne.s32.totalorder %s31_s19, %s471_s29  ;;  %p477_p5 = scmp.lt.s32.totalorder %s471_s29, %s471_s29 }
   0xd   :  { %p478_p6 = por %p477_p5, %p476_p4 }
   0xf   :  { %p479_p7 = pnand %p478_p6, %p472_p3 }
  0x11   :  { %482 = shalt.err (!%p479_p7)
}
  0x12   :  { %s557_s30 = smov 64   ;;  %s558_s6 = smov 4  }
  0x13   :  { %36 = dma.hbm_to_vmem [thread:$0]  %s666_s1, 1024, %s31_s19, [#allocation7], %s557_s30, %s557_s30, %s558_s6  }
  0x14   :  { %s483_s11 = scalar_lea.hbm %s665_s0, 128 }
  0x15   :  { %p484_p8 = scmp.ne.s32.totalorder %s665_s0, %s483_s11  ;;  %p487_p9 = scmp.lt.u32.totalorder %s483_s11, %s665_s0 }
  0x17   :  { %p489_p10 = pnand %p487_p9, %p484_p8 }
  0x19   :  { %492 = shalt.err (!%p489_p10)
}
  0x1a   :  { %s493_s16 = scalar_lea.vmem %s595_s21, 128  ;;  %p498_p12 = scmp.lt.s32.totalorder %s595_s21, %s595_s21 }
  0x1b   :  { %p494_p11 = scmp.ne.s32.totalorder %s595_s21, %s493_s16  ;;  %p499_p13 = scmp.lt.s32.totalorder %s493_s16, %s493_s16 }
  0x1d   :  { %p500_p0 = por %p499_p13, %p498_p12 }
  0x1f   :  { %p501_p1 = pnand %p500_p0, %p494_p11 }
  0x21   :  { %504 = shalt.err (!%p501_p1)
}
  0x22   :  { %24 = dma.hbm_to_vmem [thread:$0]  %s665_s0, 128, %s595_s21, [#allocation4], %s557_s30, %s557_s30, %s558_s6  }
  0x23   :  { %s559_s18 = smov [#allocation8]   ;;  %s505_s23 = scalar_lea.hbm %s668_s3, 1024 }
  0x24   :  { %s44_s19 = sshll.u32 %s559_s18, 4  ;;  %p506_p2 = scmp.ne.s32.totalorder %s668_s3, %s505_s23  ;;  %s45_s19 = int_to_ptr.vmem [resolvable:$true] %s44_s19 }
  0x25   :  { %p509_p3 = scmp.lt.u32.totalorder %s505_s23, %s668_s3 }
  0x27   :  { %p511_p4 = pnand %p509_p3, %p506_p2 }
  0x29   :  { %514 = shalt.err (!%p511_p4)
}
  0x2a   :  { %s515_s28 = scalar_lea.vmem %s45_s19, 1024  ;;  %p520_p6 = scmp.lt.s32.totalorder %s45_s19, %s45_s19 }
  0x2b   :  { %p516_p5 = scmp.ne.s32.totalorder %s45_s19, %s515_s28  ;;  %p521_p7 = scmp.lt.s32.totalorder %s515_s28, %s515_s28 }
  0x2d   :  { %p522_p8 = por %p521_p7, %p520_p6 }
  0x2f   :  { %p523_p9 = pnand %p522_p8, %p516_p5 }
  0x31   :  { %526 = shalt.err (!%p523_p9)
}
  0x32   :  { %50 = dma.hbm_to_vmem [thread:$0]  %s668_s3, 1024, %s45_s19, [#allocation7], %s557_s30, %s557_s30, %s558_s6  }
  0x33   :  { %549 = dma.done.wait [#allocation4], 128  }
  0x34   :  { %550 = vsyncadd [#allocation4], 4294967168 }
  0x35   :  { %551 = dma.done.wait [#allocation7], 2048  }
  0x36   :  { %552 = vsyncadd [#allocation7], 4294965248  ;;  %v560_v0 = vmov 0.0   ;;  %vm561_vm0 = vmmov 0   ;;  %v440_v1 = vld [vmem:[#allocation6] sm:$0xff]   ;;  %v441_v2 = vld [vmem:[#allocation6 + $0x8] sm:$0xff]  }
  0x37   :  { %390 = vmatprep.subr.bf16.mxu0 %v560_v0  ;;  %406 = vmatprep.mubr.msk.bf16.mxu0 %vm561_vm0, %v560_v0  ;;  %v442_v3 = vld [vmem:[#allocation6 + $0x10] sm:$0xff]   ;;  %v449_v4 = vld [vmem:[#allocation8] sm:$0xff]   ;;  %v443_v5 = vld [vmem:[#allocation6 + $0x18] sm:$0xff]   ;;  %s562_s6 = smov [#allocation9]  }
  0x38   :  { %410 = vmatprep.subr.bf16.mxu1 %v560_v0  ;;  %426 = vmatprep.mubr.msk.bf16.mxu1 %vm561_vm0, %v560_v0  ;;  %v444_v6 = vld [vmem:[#allocation6 + $0x20] sm:$0xff]   ;;  %v445_v7 = vld [vmem:[#allocation6 + $0x28] sm:$0xff]   ;;  %v446_v8 = vld [vmem:[#allocation6 + $0x30] sm:$0xff]   ;;  %s340_s7 = sshll.u32 %s562_s6, 4  ;;  %s341_s7 = int_to_ptr.vmem [resolvable:$true] %s340_s7 }
  0x39   :  { %391 = vmatpush3.bf16.msra.mxu0 %v440_v1  ;;  %411 = vmatpush3.bf16.msra.mxu1 %v449_v4  ;;  %v447_v9 = vld [vmem:[#allocation6 + $0x38] sm:$0xff]   ;;  %v450_v11 = vld [vmem:[#allocation8 + $0x8] sm:$0xff]   ;;  %v451_v12 = vld [vmem:[#allocation8 + $0x10] sm:$0xff]   ;;  %s527_s8 = scalar_lea.vmem %s341_s7, 256  ;;  %p532_p11 = scmp.lt.s32.totalorder %s341_s7, %s341_s7 }
  0x3a   :  { %392 = vmatprep.subr.bf16.mxu0 %v560_v0  ;;  %412 = vmatprep.subr.bf16.mxu1 %v560_v0  ;;  %v448_v10 = vld [vmem:[#allocation3] sm:$0xff]   ;;  %v453_v14 = vld [vmem:[#allocation8 + $0x20] sm:$0xff]   ;;  %v454_v15 = vld [vmem:[#allocation8 + $0x28] sm:$0xff]   ;;  %p528_p10 = scmp.ne.s32.totalorder %s341_s7, %s527_s8  ;;  %p533_p12 = scmp.lt.s32.totalorder %s527_s8, %s527_s8 }
  0x3b   :  { %v452_v13 = vld [vmem:[#allocation8 + $0x18] sm:$0xff]   ;;  %v455_v16 = vld [vmem:[#allocation8 + $0x30] sm:$0xff]  }
  0x3c   :  { %v456_v17 = vld [vmem:[#allocation8 + $0x38] sm:$0xff]   ;;  %p534_p13 = por %p533_p12, %p532_p11 }
  0x3d   :  { %393 = vmatpush3.bf16.msra.mxu0 %v441_v2  ;;  %413 = vmatpush3.bf16.msra.mxu1 %v450_v11  ;;  %v353_v18 = vld [vmem:[%s667_s2] ss:$0 sm:$0xff] }
  0x3e   :  { %394 = vmatprep.subr.bf16.mxu0 %v560_v0  ;;  %414 = vmatprep.subr.bf16.mxu1 %v560_v0  ;;  %v371_v44 = vld [vmem:[%s669_s4] ss:$0 sm:$0xff]  ;;  %p535_p0 = pnand %p534_p13, %p528_p10 }
  0x41   :  { %395 = vmatpush3.bf16.msra.mxu0 %v442_v3  ;;  %415 = vmatpush3.bf16.msra.mxu1 %v451_v12 }
  0x42   :  { %396 = vmatprep.subr.bf16.mxu0 %v560_v0  ;;  %416 = vmatprep.subr.bf16.mxu1 %v560_v0 }
  0x45   :  { %397 = vmatpush3.bf16.msra.mxu0 %v443_v5  ;;  %417 = vmatpush3.bf16.msra.mxu1 %v452_v13 }
  0x46   :  { %398 = vmatprep.subr.bf16.mxu0 %v560_v0  ;;  %418 = vmatprep.subr.bf16.mxu1 %v560_v0 }
  0x49   :  { %399 = vmatpush3.bf16.msra.mxu0 %v444_v6  ;;  %419 = vmatpush3.bf16.msra.mxu1 %v453_v14 }
  0x4a   :  { %400 = vmatprep.subr.bf16.mxu0 %v560_v0  ;;  %420 = vmatprep.subr.bf16.mxu1 %v560_v0 }
  0x4d   :  { %401 = vmatpush3.bf16.msra.mxu0 %v445_v7  ;;  %421 = vmatpush3.bf16.msra.mxu1 %v454_v15 }
  0x4e   :  { %402 = vmatprep.subr.bf16.mxu0 %v560_v0  ;;  %422 = vmatprep.subr.bf16.mxu1 %v560_v0 }
  0x51   :  { %403 = vmatpush3.bf16.msra.mxu0 %v446_v8  ;;  %423 = vmatpush3.bf16.msra.mxu1 %v455_v16 }
  0x52   :  { %404 = vmatprep.subr.bf16.mxu0 %v560_v0  ;;  %424 = vmatprep.subr.bf16.mxu1 %v560_v0 }
  0x55   :  { %405 = vmatpush3.bf16.msra.mxu0 %v447_v9  ;;  %425 = vmatpush3.bf16.msra.mxu1 %v456_v17 }
  0x58   :  { %407 = vmatmul.mubr.bf16.vlgmr.msra.gmra.mrb[0].mxu0 %v448_v10 }
 0x12b   :  { %v182_v19 = vpop.f32.mrb[0].mxu0 }
 0x12c   :  { %v183_v20 = vadd.f32 %v353_v18, %v182_v19  ;;  %v408_v21 = vpop.f32.mrb[1].mxu0 }
 0x12d   :  { %v185_v22 = vpop.f32.mrb[2].mxu0 }
 0x12e   :  { %v193_v23 = vmul.f32 %v183_v20, %v183_v20  ;;  %v186_v24 = vadd.f32 %v353_v18, %v185_v22  ;;  %v409_v25 = vpop.f32.mrb[3].mxu0  ;;  %v191_v28 = vmul.f32 0.7978846, %v183_v20  ;;  %v189_v38 = vmul.f32 0.5, %v183_v20 }
 0x130   :  { %v195_v26 = vmul.f32 0.044715, %v193_v23  ;;  %v194_v27 = vmul.f32 %v186_v24, %v186_v24  ;;  %v192_v32 = vmul.f32 0.7978846, %v186_v24  ;;  %v190_v39 = vmul.f32 0.5, %v186_v24 }
 0x132   :  { %v197_v29 = vadd.f32 1.0, %v195_v26  ;;  %v196_v30 = vmul.f32 0.044715, %v194_v27 }
 0x134   :  { %v199_v31 = vmul.f32 %v197_v29, %v191_v28  ;;  %v198_v33 = vadd.f32 1.0, %v196_v30 }
 0x136   :  { %457 = vtanh.f32 %v199_v31  ;;  %v200_v34 = vmul.f32 %v198_v33, %v192_v32 }
 0x138   :  { %459 = vtanh.f32 %v200_v34 }
 0x140   :  { %v458_v35 = vpop.eup %457 }
 0x141   :  { %v203_v36 = vadd.f32 1.0, %v458_v35 }
 0x142   :  { %v460_v37 = vpop.eup %459 }
 0x143   :  { %v204_v40 = vadd.f32 1.0, %v460_v37  ;;  %v205_v41 = vmul.f32 %v203_v36, %v189_v38 }
 0x145   :  { %v206_v42 = vmul.f32 %v204_v40, %v190_v39 }
 0x147   :  { %v209_v43 = vpack.c.bf16 %v206_v42, %v205_v41 }
 0x149   :  { %427 = vmatmul.mubr.bf16.vlgmr.msra.gmra.mrb[0].mxu1 %v209_v43 }
 0x21c   :  { %v308_v45 = vpop.f32.mrb[0].mxu1 }
 0x21d   :  { %v331_v46 = vadd.f32 %v371_v44, %v308_v45  ;;  %v428_v47 = vpop.f32.mrb[1].mxu1 }
 0x21e   :  { %v311_v48 = vpop.f32.mrb[2].mxu1 }
 0x21f   :  { %333 = vst [vmem:[#allocation9] sm:$0xff] %v331_v46  ;;  %v332_v49 = vadd.f32 %v371_v44, %v311_v48  ;;  %v429_v50 = vpop.f32.mrb[3].mxu1 }
 0x221   :  { %334 = vst [vmem:[#allocation9 + $0x8] sm:$0xff] %v332_v49 }
 0x222   :  { %538 = shalt.err (!%p535_p0)
}
 0x223   :  { %s539_s10 = scalar_lea.hbm %s670_s5, 256 }
 0x224   :  { %p540_p1 = scmp.ne.s32.totalorder %s670_s5, %s539_s10  ;;  %p543_p2 = scmp.lt.u32.totalorder %s539_s10, %s670_s5 }
 0x226   :  { %p545_p3 = pnand %p543_p2, %p540_p1 }
 0x228   :  { %548 = shalt.err (!%p545_p3)
}
 0x229   :  { %s563_s15 = smov 128   ;;  %s564_s16 = smov 8  }
 0x22a   :  { %346 = dma.vmem_to_hbm [thread:$0]  %s341_s7, 256, %s670_s5, [#allocation5], %s563_s15, %s563_s15, %s564_s16  }
 0x22b   :  { %553 = dma.done.wait [#allocation5], 256  }
 0x22c   :  { %554 = vsyncadd [#allocation5], 4294967040 }
 0x22d   :  { %350 = vsyncpa [#allocation4], 1 }
 0x22e   :  { %351 = vsyncpa [#allocation7], 1 }
 0x22f   :  { %352 = vsyncpa [#allocation5], 1 }

</bundles_post_ra>
